<compile_context>
chip_gen: v6e
topology: v6e:2x2x1
jax: 0.10.0
libtpu: 0.0.40
codegen_flags: <defaults>
</compile_context>

<pallas_src>
from functools import partial
from typing import NamedTuple

import jax
import jax.numpy as jnp
import numpy as np
from jax import lax
from jax.experimental import pallas as pl

_LANES = 128


# ----------------------------------------------------------------------------
# Packed parameter-slab layout (row offsets inside the (rows, 128) bf16 slab)
# ----------------------------------------------------------------------------
class _SlabLayout(NamedTuple):
    wkv: int
    bkv: int
    qrep: int
    wo: int
    bo: int
    w1: int
    b1: int
    w2: int
    b2: int
    perm: int
    rows: int


def _slab_layout(x_dim, z_dim, bsz):
    """Multi-row tensors start on 16-row (bf16 sublane-tile) boundaries so no
    static slice crosses a tile boundary mid-tensor."""
    D, Z, B = x_dim, z_dim, bsz
    assert 4 * D <= _LANES and 2 * D <= _LANES and 2 * Z <= _LANES and B * Z <= _LANES

    def up16(n):
        return (n + 15) & ~15

    wkv = 0                        # (D, 4D)     lanes [k_mu | v_mu | k_lv | v_lv]
    bkv = up16(wkv + D)            # (1, 4D)
    qrep = up16(bkv + 1)           # (2*B*Z, D)  pre-scaled q, replicated per batch
    wo = up16(qrep + 2 * B * Z)    # (2D, 2D)    blockdiag(Wo_mu^T, Wo_lv^T)
    bo = up16(wo + 2 * D)          # (1, 2D)
    w1 = up16(bo + 1)              # (2D, 2Z)    blockdiag(W1_mu^T, W1_lv^T)
    b1 = up16(w1 + 2 * D)          # (1, 2Z)
    w2 = up16(b1 + 1)              # (2, 2Z)     [[w2_mu, 0], [0, w2_lv]]
    b2 = w2 + 2                    # (2, 1)
    perm = up16(b2 + 2)            # (B*Z, B*Z)  .view() lane permutation (0/1)
    rows = up16(perm + B * Z)
    return _SlabLayout(wkv, bkv, qrep, wo, bo, w1, b1, w2, b2, perm, rows)


# ----------------------------------------------------------------------------
# Fused kernel: K/V proj -> attention (both branches) -> out-proj -> MLPs ->
#               .view() lane shuffle -> reparameterize -> single fused store
# ----------------------------------------------------------------------------
def _fused_kernel(x_ref, eps_ref, slab_ref, out_ref, *, bsz, z_dim, tokens, x_dim, lay):
    f32, bf16 = jnp.float32, jnp.bfloat16
    D, Z, T, B = x_dim, z_dim, tokens, bsz
    R = B * Z                      # MLP rows == output lanes
    G = 2 * B                      # merged (branch, batch) axis: [mu|b0, mu|b1, lv|b0, lv|b1]

    # ---- packed parameters: static, tile-aligned views into the bf16 slab --
    wkv = slab_ref[lay.wkv:lay.wkv + D, :]                              # (D, 4D)
    bkv = slab_ref[lay.bkv:lay.bkv + 1, :]                              # (1, 4D)
    q6 = slab_ref[lay.qrep:lay.qrep + G * Z, 0:D].reshape(G, Z, D)      # (G, Z, D)
    wo_bd = slab_ref[lay.wo:lay.wo + 2 * D, 0:2 * D]                    # (2D, 2D)
    bo = slab_ref[lay.bo:lay.bo + 1, 0:2 * D]                           # (1, 2D)
    w1_bd = slab_ref[lay.w1:lay.w1 + 2 * D, 0:2 * Z]                    # (2D, 2Z)
    b1 = slab_ref[lay.b1:lay.b1 + 1, 0:2 * Z]                           # (1, 2Z)
    w2 = slab_ref[lay.w2:lay.w2 + 2, 0:2 * Z]                           # (2, 2Z)
    b2 = slab_ref[lay.b2:lay.b2 + 2, 0:1]                               # (2, 1)
    perm = slab_ref[lay.perm:lay.perm + R, 0:R].astype(f32)             # (R, R) 0/1

    # ---- K/V projection, both branches & whole batch: ONE matmul ----------
    xb = x_ref[...].astype(bf16)                                        # (B*T, D) rows (b,t)
    kv = jnp.dot(xb, wkv, preferred_element_type=f32) + bkv             # (B*T, 4D) f32

    # ---- attention with (branch, batch) merged into one einsum batch axis --
    k6 = jnp.concatenate([kv[:, 0:D], kv[:, 2 * D:3 * D]], axis=0)
    k6 = k6.reshape(G, T, D).astype(bf16)
    v6 = jnp.concatenate([kv[:, D:2 * D], kv[:, 3 * D:4 * D]], axis=0)
    v6 = v6.reshape(G, T, D).astype(bf16)

    s = jnp.einsum("gzd,gtd->gzt", q6, k6, preferred_element_type=f32)   # (G, Z, T)
    s = s - jnp.max(s, axis=-1, keepdims=True)
    p = jnp.exp(s)
    p = p * pl.reciprocal(jnp.sum(p, axis=-1, keepdims=True), approx=True)
    attn = jnp.einsum("gzt,gtd->gzd", p.astype(bf16), v6,
                      preferred_element_type=f32)                        # (G, Z, D)

    # pack the two branches on lanes; rows stay batch-major (r = b*Z + z)
    a_cat = jnp.concatenate([attn[0:B], attn[B:G]], axis=-1).reshape(R, 2 * D)

    # ---- out-proj + MLP, both branches fused via block-diagonal weights ----
    o = jnp.dot(a_cat.astype(bf16), wo_bd, preferred_element_type=f32) + bo   # (R, 2D)
    h = jnp.dot(o.astype(bf16), w1_bd, preferred_element_type=f32) + b1       # (R, 2Z)
    h = jnp.maximum(h, 0.0)
    rows_bm = lax.dot_general(w2, h.astype(bf16), (((1,), (1,)), ((), ())),
                              preferred_element_type=f32) + b2                # (2, R)
    # rows_bm[0] = mu, rows_bm[1] = logvar, lanes in batch-major order.

    # ---- PyTorch `.view(bsz, z_dim, x_dim)` reorder on the final rows only --
    rows_view = jnp.dot(rows_bm, perm, preferred_element_type=f32)            # (2, R)

    mu = rows_view[0:1, :]
    lv = rows_view[1:2, :]
    z = eps_ref[...] * jnp.exp(0.5 * lv) + mu                                 # reparam

    out_ref[...] = jnp.concatenate([mu, lv, z], axis=0)                       # (3, R)


# ----------------------------------------------------------------------------
# Host-side, one-time weight packing into ONE bf16 slab
# ----------------------------------------------------------------------------
def prepare_params(params, bsz):
    z_dim, _, x_dim = params["x_to_mu"].shape
    D, Z, B = int(x_dim), int(z_dim), int(bsz)
    R, G = B * Z, 2 * B
    lay = _slab_layout(D, Z, B)
    scale = 1.0 / float(np.sqrt(D))

    wq_m, bq_m, wk_m, bk_m, wv_m, bv_m, wo_m, bo_m = map(np.asarray, params["attn_mu"])
    wq_l, bq_l, wk_l, bk_l, wv_l, bv_l, wo_l, bo_l = map(np.asarray, params["attn_lv"])
    w1_m, b1_m, w2_m, b2_m = map(np.asarray, params["mlp_mu"])
    w1_l, b1_l, w2_l, b2_l = map(np.asarray, params["mlp_lv"])
    qp_m = np.asarray(params["x_to_mu"])[:, 0, :]
    qp_l = np.asarray(params["x_to_lv"])[:, 0, :]

    slab = np.zeros((lay.rows, _LANES), np.float32)

    # K/V projection (pre-transposed), lanes [k_mu | v_mu | k_lv | v_lv].
    slab[lay.wkv:lay.wkv + D, 0:4 * D] = np.concatenate(
        [wk_m.T, wv_m.T, wk_l.T, wv_l.T], axis=1)
    slab[lay.bkv, 0:4 * D] = np.concatenate([bk_m[0], bv_m[0], bk_l[0], bv_l[0]])

    # q is parameter-only -> constant-fold (fairseq scales AFTER the bias),
    # replicated per batch in (branch, batch) order.
    q_mu = (qp_m @ wq_m.T + bq_m[0]) * scale
    q_lv = (qp_l @ wq_l.T + bq_l[0]) * scale
    slab[lay.qrep:lay.qrep + G * Z, 0:D] = np.concatenate(
        [np.tile(q_mu, (B, 1)), np.tile(q_lv, (B, 1))], axis=0)

    # out-proj: block-diagonal, pre-transposed.
    slab[lay.wo:lay.wo + D, 0:D] = wo_m.T
    slab[lay.wo + D:lay.wo + 2 * D, D:2 * D] = wo_l.T
    slab[lay.bo, 0:D] = bo_m[0]
    slab[lay.bo, D:2 * D] = bo_l[0]

    # MLP layer 1: block-diagonal, pre-transposed.
    slab[lay.w1:lay.w1 + D, 0:Z] = w1_m.T
    slab[lay.w1 + D:lay.w1 + 2 * D, Z:2 * Z] = w1_l.T
    slab[lay.b1, 0:Z] = b1_m[0]
    slab[lay.b1, Z:2 * Z] = b1_l[0]

    # MLP layer 2: each branch's row in its own lane block.
    slab[lay.w2, 0:Z] = w2_m[0]
    slab[lay.w2 + 1, Z:2 * Z] = w2_l[0]
    slab[lay.b2, 0] = b2_m[0, 0]
    slab[lay.b2 + 1, 0] = b2_l[0, 0]

    # `.view(bsz, z_dim, x_dim)` lane permutation:
    #   view column f  <-  batch-major column (f % bsz) * z_dim + f // bsz
    f = np.arange(R)
    slab[lay.perm + (f % B) * Z + f // B, f] = 1.0

    return {"slab": jnp.asarray(slab, dtype=jnp.bfloat16),
            "z_dim": Z, "x_dim": D, "bsz": B}


# ----------------------------------------------------------------------------
# Fused forward (matches LatentGeneratorNetworkB.forward)
# ----------------------------------------------------------------------------
@partial(jax.jit, static_argnames=("z_dim",))
def latent_generator_forward(slab, x_tbd, eps, *, z_dim):
    """x_tbd: (tokens, bsz, x_dim); eps: (bsz, 1, z_dim).
    Returns (z, mu, logvar), each (bsz, 1, z_dim)."""
    T, B, D = x_tbd.shape
    Z = z_dim
    R = B * Z
    lay = _slab_layout(D, Z, B)
    assert slab.shape == (lay.rows, _LANES)

    x_flat = jnp.transpose(x_tbd, (1, 0, 2)).reshape(B * T, D)   # batch-major (b,t) rows
    eps_row = eps.reshape(1, R)                                  # already in view order

    out = pl.pallas_call(
        partial(_fused_kernel, bsz=B, z_dim=Z, tokens=T, x_dim=D, lay=lay),
        out_shape=jax.ShapeDtypeStruct((3, R), jnp.float32),
    )(x_flat, eps_row, slab)

    mu = out[0].reshape(B, 1, Z)
    lv = out[1].reshape(B, 1, Z)
    z = out[2].reshape(B, 1, Z)
    return z, mu, lv


# ----------------------------------------------------------------------------
# Pure-JAX f32 reference (same math, HIGHEST precision) for verification
# ----------------------------------------------------------------------------
def reference_forward(params, x_tbd, eps):
    T, bsz, x_dim = x_tbd.shape
    z_dim = params["x_to_mu"].shape[0]
    scale = 1.0 / float(np.sqrt(x_dim))
    hi = jax.lax.Precision.HIGHEST
    mm = lambda a, b: jnp.matmul(a, b, precision=hi)

    def attn_ref(qparam, w):
        wq, bq, wk, bk, wv, bv, wo, bo = w
        q = (mm(qparam, wq.T) + bq[0]) * scale
        outs = []
        for b in range(bsz):
            xb = x_tbd[:, b, :]
            k = mm(xb, wk.T) + bk[0]
            v = mm(xb, wv.T) + bv[0]
            p = jax.nn.softmax(mm(q, k.T), axis=-1)
            outs.append(mm(mm(p, v), wo.T) + bo[0])
        return jnp.stack(outs, axis=1)                  # (z_dim, bsz, x_dim)

    def mlp_ref(x, w):
        w1, b1, w2, b2 = w
        h = jnp.maximum(mm(x, w1.T) + b1[0], 0.0)
        return mm(h, w2.T) + b2[0]

    a_mu = attn_ref(params["x_to_mu"][:, 0, :], params["attn_mu"]).reshape(bsz, z_dim, x_dim)
    a_lv = attn_ref(params["x_to_lv"][:, 0, :], params["attn_lv"]).reshape(bsz, z_dim, x_dim)
    mu = mlp_ref(a_mu, params["mlp_mu"]).reshape(bsz, 1, z_dim)
    lv = mlp_ref(a_lv, params["mlp_lv"]).reshape(bsz, 1, z_dim)
    z = eps * jnp.exp(0.5 * lv) + mu
    return z, mu, lv


# ----------------------------------------------------------------------------
# Deterministic parameter construction
# ----------------------------------------------------------------------------
def make_params(key, x_dim, z_dim):
    def lin(k, out_d, in_d):
        kw, kb = jax.random.split(k)
        s = 1.0 / np.sqrt(in_d)
        w = jax.random.normal(kw, (out_d, in_d), jnp.float32) * s
        b = jax.random.normal(kb, (1, out_d), jnp.float32) * s
        return w, b

    keys = jax.random.split(key, 12)
    params = {
        "x_to_mu": jax.random.normal(keys[0], (z_dim, 1, x_dim), jnp.float32),
        "x_to_lv": jax.random.normal(keys[1], (z_dim, 1, x_dim), jnp.float32),
    }
    for name, base in (("attn_mu", 2), ("attn_lv", 6)):
        wq, bq = lin(keys[base + 0], x_dim, x_dim)
        wk, bk = lin(keys[base + 1], x_dim, x_dim)
        wv, bv = lin(keys[base + 2], x_dim, x_dim)
        wo, bo = lin(keys[base + 3], x_dim, x_dim)
        params[name] = (wq, bq, wk, bk, wv, bv, wo, bo)
    for name, base in (("mlp_mu", 10), ("mlp_lv", 11)):
        k1, k2 = jax.random.split(keys[base])
        w1, b1 = lin(k1, z_dim, x_dim)
        w2, b2 = lin(k2, 1, z_dim)
        params[name] = (w1, b1, w2, b2)
    return params


if __name__ == "__main__":
    tokens, bsz, x_dim, z_dim = 8, 2, 32, 16

    key = jax.random.PRNGKey(0)
    kx, kp, keps = jax.random.split(key, 3)
    x = jax.random.normal(kx, (tokens, bsz, x_dim), jnp.float32)
    params = make_params(kp, x_dim, z_dim)
    # TODO(synk): torch.randn_like draws eps inside forward; here eps is a
    # deterministic jax.random draw supplied by the caller.
    eps = jax.random.normal(keps, (bsz, 1, z_dim), jnp.float32)

    packed = prepare_params(params, bsz)
    z, mu, lv = latent_generator_forward(packed["slab"], x, eps, z_dim=packed["z_dim"])
    jax.block_until_ready((z, mu, lv))

    z_ref, mu_ref, lv_ref = reference_forward(params, x, eps)
    assert z.shape == (bsz, 1, z_dim) and mu.shape == (bsz, 1, z_dim) and lv.shape == (bsz, 1, z_dim)
    # Tolerance sized for bf16 MXU operands (f32 accumulation) in the kernel vs
    # an f32 Precision.HIGHEST reference on O(1) outputs.
    assert np.allclose(np.asarray(mu), np.asarray(mu_ref), rtol=5e-2, atol=5e-2)
    assert np.allclose(np.asarray(lv), np.asarray(lv_ref), rtol=5e-2, atol=5e-2)
    assert np.allclose(np.asarray(z), np.asarray(z_ref), rtol=5e-2, atol=5e-2)

    print("KERNEL_OK")
</pallas_src>

<mosaic_0001>
module attributes {stable_mosaic.version = 11 : i64} {
  func.func @_fused_kernel(%arg0: memref<16x32xf32, #tpu.memory_space<vmem>>, %arg1: memref<1x32xf32, #tpu.memory_space<vmem>>, %arg2: memref<320x128xbf16, #tpu.memory_space<vmem>>, %arg3: memref<3x32xf32, #tpu.memory_space<vmem>>) attributes {dimension_semantics = [], scalar_prefetch = 0 : i64, scratch_operands = 0 : i64, tpu.core_type = #tpu.core_type<tc>} {
    %c0 = arith.constant 0 : index
    %c0_0 = arith.constant 0 : index
    %0 = vector.load %arg2[%c0, %c0_0] : memref<320x128xbf16, #tpu.memory_space<vmem>>, vector<32x128xbf16>
    %c32 = arith.constant 32 : index
    %c0_1 = arith.constant 0 : index
    %1 = vector.load %arg2[%c32, %c0_1] : memref<320x128xbf16, #tpu.memory_space<vmem>>, vector<1x128xbf16>
    %c48 = arith.constant 48 : index
    %c0_2 = arith.constant 0 : index
    %2 = vector.load %arg2[%c48, %c0_2] : memref<320x128xbf16, #tpu.memory_space<vmem>>, vector<64x32xbf16>
    %3 = vector.shape_cast %2 : vector<64x32xbf16> to vector<4x16x32xbf16>
    %c112 = arith.constant 112 : index
    %c0_3 = arith.constant 0 : index
    %4 = vector.load %arg2[%c112, %c0_3] : memref<320x128xbf16, #tpu.memory_space<vmem>>, vector<64x64xbf16>
    %c176 = arith.constant 176 : index
    %c0_4 = arith.constant 0 : index
    %5 = vector.load %arg2[%c176, %c0_4] : memref<320x128xbf16, #tpu.memory_space<vmem>>, vector<1x64xbf16>
    %c192 = arith.constant 192 : index
    %c0_5 = arith.constant 0 : index
    %6 = vector.load %arg2[%c192, %c0_5] : memref<320x128xbf16, #tpu.memory_space<vmem>>, vector<64x32xbf16>
    %c256 = arith.constant 256 : index
    %c0_6 = arith.constant 0 : index
    %7 = vector.load %arg2[%c256, %c0_6] : memref<320x128xbf16, #tpu.memory_space<vmem>>, vector<1x32xbf16>
    %c272 = arith.constant 272 : index
    %c0_7 = arith.constant 0 : index
    %8 = vector.load %arg2[%c272, %c0_7] : memref<320x128xbf16, #tpu.memory_space<vmem>>, vector<2x32xbf16>
    %c274 = arith.constant 274 : index
    %c0_8 = arith.constant 0 : index
    %9 = vector.load %arg2[%c274, %c0_8] : memref<320x128xbf16, #tpu.memory_space<vmem>>, vector<2x1xbf16>
    %c288 = arith.constant 288 : index
    %c0_9 = arith.constant 0 : index
    %10 = vector.load %arg2[%c288, %c0_9] : memref<320x128xbf16, #tpu.memory_space<vmem>>, vector<32x32xbf16>
    %11 = arith.extf %10 : vector<32x32xbf16> to vector<32x32xf32>
    %c0_10 = arith.constant 0 : index
    %c0_11 = arith.constant 0 : index
    %12 = vector.load %arg0[%c0_10, %c0_11] : memref<16x32xf32, #tpu.memory_space<vmem>>, vector<16x32xf32>
    %13 = arith.truncf %12 : vector<16x32xf32> to vector<16x32xbf16>
    %cst = arith.constant dense<0.000000e+00> : vector<16x128xf32>
    %14 = tpu.matmul %13, %0, %cst {dimension_numbers = #tpu.dot_dimension_numbers<[1], [0], [0], [1], [0, 0, 1, 1], [], []>} : vector<16x32xbf16>, vector<32x128xbf16>, vector<16x128xf32> -> vector<16x128xf32>
    %15 = arith.extf %1 : vector<1x128xbf16> to vector<1x128xf32>
    %16 = vector.broadcast %15 : vector<1x128xf32> to vector<16x128xf32>
    %17 = arith.addf %14, %16 : vector<16x128xf32>
    %18 = vector.extract_strided_slice %17 {offsets = [0, 0], sizes = [16, 32], strides = [1, 1]} : vector<16x128xf32> to vector<16x32xf32>
    %19 = vector.extract_strided_slice %17 {offsets = [0, 64], sizes = [16, 32], strides = [1, 1]} : vector<16x128xf32> to vector<16x32xf32>
    %20 = tpu.concatenate %18, %19 in 0 : vector<16x32xf32>, vector<16x32xf32> -> vector<32x32xf32>
    %21 = vector.shape_cast %20 : vector<32x32xf32> to vector<4x8x32xf32>
    %22 = arith.truncf %21 : vector<4x8x32xf32> to vector<4x8x32xbf16>
    %23 = vector.extract_strided_slice %17 {offsets = [0, 32], sizes = [16, 32], strides = [1, 1]} : vector<16x128xf32> to vector<16x32xf32>
    %24 = vector.extract_strided_slice %17 {offsets = [0, 96], sizes = [16, 32], strides = [1, 1]} : vector<16x128xf32> to vector<16x32xf32>
    %25 = tpu.concatenate %23, %24 in 0 : vector<16x32xf32>, vector<16x32xf32> -> vector<32x32xf32>
    %26 = vector.shape_cast %25 : vector<32x32xf32> to vector<4x8x32xf32>
    %27 = arith.truncf %26 : vector<4x8x32xf32> to vector<4x8x32xbf16>
    "tpu.trace_start"() <{level = 10 : i32, message = "gzd,gtd->gzt"}> : () -> ()
    %cst_12 = arith.constant dense<0.000000e+00> : vector<4x16x8xf32>
    %28 = tpu.matmul %3, %22, %cst_12 {dimension_numbers = #tpu.dot_dimension_numbers<[2], [2], [1], [1], [0, 0, 0, 1, 1, 1], [0], [0]>} : vector<4x16x32xbf16>, vector<4x8x32xbf16>, vector<4x16x8xf32> -> vector<4x16x8xf32>
    "tpu.trace_stop"() : () -> ()
    %cst_13 = arith.constant dense<0xFF800000> : vector<4x16xf32>
    %29 = vector.multi_reduction <maximumf>, %28, %cst_13 [2] : vector<4x16x8xf32> to vector<4x16xf32>
    %30 = vector.shape_cast %29 : vector<4x16xf32> to vector<4x16x1xf32>
    %31 = vector.broadcast %30 : vector<4x16x1xf32> to vector<4x16x8xf32>
    %32 = arith.subf %28, %31 : vector<4x16x8xf32>
    %33 = math.exp %32 : vector<4x16x8xf32>
    %cst_14 = arith.constant dense<0.000000e+00> : vector<4x16xf32>
    %34 = vector.multi_reduction <add>, %33, %cst_14 [2] : vector<4x16x8xf32> to vector<4x16xf32>
    %35 = vector.shape_cast %34 : vector<4x16xf32> to vector<4x16x1xf32>
    %36 = tpu.reciprocal %35 {approx = true} : vector<4x16x1xf32> -> vector<4x16x1xf32>
    %37 = vector.broadcast %36 : vector<4x16x1xf32> to vector<4x16x8xf32>
    %38 = arith.mulf %33, %37 : vector<4x16x8xf32>
    %39 = arith.truncf %38 : vector<4x16x8xf32> to vector<4x16x8xbf16>
    "tpu.trace_start"() <{level = 10 : i32, message = "gzt,gtd->gzd"}> : () -> ()
    %cst_15 = arith.constant dense<0.000000e+00> : vector<4x16x32xf32>
    %40 = tpu.matmul %39, %27, %cst_15 {dimension_numbers = #tpu.dot_dimension_numbers<[2], [1], [1], [2], [0, 0, 0, 1, 1, 2], [0], [0]>} : vector<4x16x8xbf16>, vector<4x8x32xbf16>, vector<4x16x32xf32> -> vector<4x16x32xf32>
    "tpu.trace_stop"() : () -> ()
    %41 = vector.extract_strided_slice %40 {offsets = [0, 0, 0], sizes = [2, 16, 32], strides = [1, 1, 1]} : vector<4x16x32xf32> to vector<2x16x32xf32>
    %42 = vector.extract_strided_slice %40 {offsets = [2, 0, 0], sizes = [2, 16, 32], strides = [1, 1, 1]} : vector<4x16x32xf32> to vector<2x16x32xf32>
    %43 = tpu.concatenate %41, %42 in 2 : vector<2x16x32xf32>, vector<2x16x32xf32> -> vector<2x16x64xf32>
    %44 = vector.shape_cast %43 : vector<2x16x64xf32> to vector<32x64xf32>
    %45 = arith.truncf %44 : vector<32x64xf32> to vector<32x64xbf16>
    %cst_16 = arith.constant dense<0.000000e+00> : vector<32x64xf32>
    %46 = tpu.matmul %45, %4, %cst_16 {dimension_numbers = #tpu.dot_dimension_numbers<[1], [0], [0], [1], [0, 0, 1, 1], [], []>} : vector<32x64xbf16>, vector<64x64xbf16>, vector<32x64xf32> -> vector<32x64xf32>
    %47 = arith.extf %5 : vector<1x64xbf16> to vector<1x64xf32>
    %48 = vector.broadcast %47 : vector<1x64xf32> to vector<32x64xf32>
    %49 = arith.addf %46, %48 : vector<32x64xf32>
    %50 = arith.truncf %49 : vector<32x64xf32> to vector<32x64xbf16>
    %cst_17 = arith.constant dense<0.000000e+00> : vector<32x32xf32>
    %51 = tpu.matmul %50, %6, %cst_17 {dimension_numbers = #tpu.dot_dimension_numbers<[1], [0], [0], [1], [0, 0, 1, 1], [], []>} : vector<32x64xbf16>, vector<64x32xbf16>, vector<32x32xf32> -> vector<32x32xf32>
    %52 = arith.extf %7 : vector<1x32xbf16> to vector<1x32xf32>
    %53 = vector.broadcast %52 : vector<1x32xf32> to vector<32x32xf32>
    %54 = arith.addf %51, %53 : vector<32x32xf32>
    %cst_18 = arith.constant 0.000000e+00 : f32
    %55 = vector.broadcast %cst_18 : f32 to vector<32x32xf32>
    %56 = arith.maximumf %54, %55 : vector<32x32xf32>
    %57 = arith.truncf %56 : vector<32x32xf32> to vector<32x32xbf16>
    %cst_19 = arith.constant dense<0.000000e+00> : vector<2x32xf32>
    %58 = tpu.matmul %8, %57, %cst_19 {dimension_numbers = #tpu.dot_dimension_numbers<[1], [1], [0], [0], [0, 0, 1, 0], [], []>} : vector<2x32xbf16>, vector<32x32xbf16>, vector<2x32xf32> -> vector<2x32xf32>
    %59 = arith.extf %9 : vector<2x1xbf16> to vector<2x1xf32>
    %60 = vector.broadcast %59 : vector<2x1xf32> to vector<2x32xf32>
    %61 = arith.addf %58, %60 : vector<2x32xf32>
    %cst_20 = arith.constant dense<0.000000e+00> : vector<2x32xf32>
    %62 = tpu.matmul %61, %11, %cst_20 {dimension_numbers = #tpu.dot_dimension_numbers<[1], [0], [0], [1], [0, 0, 1, 1], [], []>} : vector<2x32xf32>, vector<32x32xf32>, vector<2x32xf32> -> vector<2x32xf32>
    %63 = vector.extract_strided_slice %62 {offsets = [0, 0], sizes = [1, 32], strides = [1, 1]} : vector<2x32xf32> to vector<1x32xf32>
    %64 = vector.extract_strided_slice %62 {offsets = [1, 0], sizes = [1, 32], strides = [1, 1]} : vector<2x32xf32> to vector<1x32xf32>
    %c0_21 = arith.constant 0 : index
    %c0_22 = arith.constant 0 : index
    %65 = vector.load %arg1[%c0_21, %c0_22] : memref<1x32xf32, #tpu.memory_space<vmem>>, vector<1x32xf32>
    %cst_23 = arith.constant 5.000000e-01 : f32
    %66 = vector.broadcast %cst_23 : f32 to vector<1x32xf32>
    %67 = arith.mulf %66, %64 : vector<1x32xf32>
    %68 = math.exp %67 : vector<1x32xf32>
    %69 = arith.mulf %65, %68 : vector<1x32xf32>
    %70 = arith.addf %69, %63 : vector<1x32xf32>
    %71 = tpu.concatenate %63, %64, %70 in 0 : vector<1x32xf32>, vector<1x32xf32>, vector<1x32xf32> -> vector<3x32xf32>
    %c0_24 = arith.constant 0 : index
    %c0_25 = arith.constant 0 : index
    %72 = vector.load %arg3[%c0_24, %c0_25] : memref<3x32xf32, #tpu.memory_space<vmem>>, vector<3x32xf32>
    tpu.vector_store %arg3[%c0_24, %c0_25], %71 {strides = array<i32>} : memref<3x32xf32, #tpu.memory_space<vmem>>, vector<3x32xf32>,
    return
  }
}

</mosaic_0001>

<bundles_post_ra>
// kernel: squeeze.4
= control target key start
LH: loop header
LB: loop body
LE: loop exit
PB: predicated region body
PF: predicated region fallthrough
CT: control target
= control target key end

     0   :  { %s77_s0 = inlined_call_operand.vmem [shape: f32[32], index: 0, kind: input, shape index: {}]   ;;  %s78_s1 = inlined_call_operand.hbm [shape: f32[2,1,16], index: 1, kind: output, shape index: {}]  }
   0x1   :  { %v6_v0 = vld [vmem:[%s77_s0] sm:$0x1] }
   0x2   :  { %2 = vsyncpa [#allocation1], 0  ;;  %7 = vst [vmem:[#allocation3] sm:$0x1] %v6_v0  ;;  %vm9_vm0 = vcmask 130048   ;;  %s59_s0 = smov 112  }
   0x3   :  { %s60_s8 = smov [#allocation0]  }
   0x4   :  { %s29_s9 = sshll.u32 %s60_s8, 4  ;;  %s30_s9 = int_to_ptr.vmem [resolvable:$true] %s29_s9 }
   0x5   :  { %s37_s10 = scalar_lea.vmem %s30_s9, 32  ;;  %p42_p1 = scmp.lt.s32.totalorder %s30_s9, %s30_s9 }
   0x6   :  { %p38_p0 = scmp.ne.s32.totalorder %s30_s9, %s37_s10  ;;  %p43_p2 = scmp.lt.s32.totalorder %s37_s10, %s37_s10 }
   0x8   :  { %p44_p3 = por %p43_p2, %p42_p1 }
   0x9   :  { %v11_v1 = vld [vmem:[#allocation3] sm:$0x1]  }
   0xa   :  { %v8_v2 = vld [vmem:[#allocation3] sm:$0x1]   ;;  %12 = vrot.lane.b32.xlu0 %v11_v1, %s59_s0  ;;  %p45_p4 = pnand %p44_p3, %p38_p0 }
   0xb   :  { %10 = vst.msk [vmem:[#allocation2] sm:$0x1] %vm9_vm0, %v8_v2  }
  0x7c   :  { %v13_v3 = vpop.permute.xlu0 %12  }
  0x7d   :  { %16 = vst.msk [vmem:[#allocation2 + $0x1] sm:$0x1] %vm9_vm0, %v13_v3  }
  0x84   :  { %v21_v4 = vld [vmem:[#allocation2] sm:$0x3] }
  0x85   :  { %24 = vst [vmem:[#allocation0] sm:$0x3] %v21_v4 }
  0x86   :  { %48 = shalt.err (!%p45_p4)
}
  0x87   :  { %32 = dma.vmem_to_hbm [thread:$0]  %s30_s9, 32, %s78_s1, [#allocation1]  }
  0x88   :  { %57 = dma.done.wait [#allocation1], 32  }
  0x89   :  { %58 = vsyncadd [#allocation1], 4294967264 }
  0x8a   :  { %34 = vsyncpa [#allocation1], 1 }

// kernel: latent_generator_forward.1
= control target key start
LH: loop header
LB: loop body
LE: loop exit
PB: predicated region body
PF: predicated region fallthrough
CT: control target
= control target key end

     0   :  { %8 = vsyncpa [#allocation3], 0  ;;  %s1288_s12 = smov [#allocation2]   ;;  %s1448_s0 = inlined_call_operand.vmem [shape: f32[16,32], index: 0, kind: input, shape index: {}]   ;;  %s1449_s1 = inlined_call_operand.vmem [shape: f32[1,32], index: 1, kind: input, shape index: {}]   ;;  %s1450_s2 = inlined_call_operand.hbm [shape: bf16[320,128], index: 2, kind: input, shape index: {}]   ;;  %s1451_s3 = inlined_call_operand.vmem [shape: f32[3,32], index: 3, kind: output, shape index: {}]  }
   0x1   :  { %s18_s13 = sshll.u32 %s1288_s12, 4  ;;  %s19_s13 = int_to_ptr.vmem [resolvable:$true] %s18_s13 }
   0x2   :  { %s1274_s14 = scalar_lea.vmem %s19_s13, 2560  ;;  %p1279_p1 = scmp.lt.s32.totalorder %s19_s13, %s19_s13 }
   0x3   :  { %p1275_p0 = scmp.ne.s32.totalorder %s19_s13, %s1274_s14  ;;  %p1280_p2 = scmp.lt.s32.totalorder %s1274_s14, %s1274_s14 }
   0x5   :  { %p1281_p3 = por %p1280_p2, %p1279_p1 }
   0x7   :  { %p1282_p4 = pnand %p1281_p3, %p1275_p0 }
   0x9   :  { %1285 = shalt.err (!%p1282_p4)
}
   0xa   :  { %s1289_s15 = smov 64   ;;  %s1290_s16 = smov 4  }
   0xb   :  { %24 = dma.hbm_to_vmem [thread:$0]  %s1450_s2, 2560, %s19_s13, [#allocation3], %s1289_s15, %s1289_s15, %s1290_s16  }
   0xc   :  { %1286 = dma.done.wait [#allocation3], 2560  }
   0xd   :  { %1287 = vsyncadd [#allocation3], 4294964736  ;;  %v1291_v0 = vmov 0.0   ;;  %vm1292_vm0 = vmmov 0   ;;  %v1218_v1 = vld [vmem:[#allocation2 + $0x8] sm:$0xff]   ;;  %v1219_v2 = vld [vmem:[#allocation2] sm:$0xff]   ;;  %v74_v6 = vlaneseq }
   0xe   :  { %1093 = vmatprep.subr.bf16.mxu0 %v1291_v0  ;;  %1097 = vmatprep.mubr.msk.bf16.mxu0 %vm1292_vm0, %v1291_v0  ;;  %v70_v3 = vld [vmem:[%s1448_s0] sm:$0xff]  ;;  %v71_v4 = vld [vmem:[%s1448_s0 + $0x8] sm:$0xff]  ;;  %vm90_vm1 = vcmask 261120   ;;  %v33_v8 = vld [vmem:[#allocation2 + $0x10] sm:$0x1]  ;;  %vm355_vm2 = vcmask 64512  }
   0xf   :  { %1101 = vmatprep.subr.bf16.mxu1 %v1291_v0  ;;  %1103 = vmatprep.mubr.msk.bf16.mxu1 %vm1292_vm0, %v1291_v0  ;;  %v72_v5 = vpack.c.bf16 %v71_v4, %v70_v3  ;;  %v1339_v7 = vshrl.u32 %v74_v6, 7  ;;  %v73_v9 = vunpack.c.l.bf16 %v33_v8  ;;  %v1220_v23 = vld [vmem:[#allocation2 + $0x18] sm:$0xff]   ;;  %v1221_v24 = vld [vmem:[#allocation2 + $0x20] sm:$0xff]   ;;  %v1222_v32 = vld [vmem:[#allocation2 + $0x28] sm:$0xff]   ;;  %s1293_s0 = smov 96   ;;  %vm454_vm3 = vcmask 1043456  }
  0x10   :  { %1094 = vmatpush3.bf16.msra.mxu0 %v1218_v1  ;;  %v1223_v33 = vld [vmem:[#allocation2 + $0x30] sm:$0xff]   ;;  %s1294_s22 = smov 32   ;;  %vm700_vm4 = vcmask 523264   ;;  %vm1006_vm5 = vcmask 1041408   ;;  %vm1008_vm6 = vcmask 256000  }
  0x11   :  { %1095 = vmatprep.subr.bf16.mxu0 %v1291_v0  ;;  %v1342_v10 = vsub.s32 0, %v1339_v7 }
  0x13   :  { %v77_v11 = vrot.slane %v73_v9, %v1342_v10 }
  0x14   :  { %1096 = vmatpush3.bf16.msra.mxu0 %v1219_v2 }
  0x15   :  { %1107 = vmatprep.subr.bf16.mxu0 %v1291_v0 }
  0x17   :  { %1098 = vmatmul.mubr.msk.bf16.vlgmr.msra.gmra.mxu0 %vm90_vm1, %v72_v5 }
  0x18   :  { %1109 = vmatprep.mubr.msk.bf16.mxu0 %vm1292_vm0, %v1291_v0 }
  0xd7   :  { %v128_v12 = vpop.f32.mrf.mxu0 }
  0xd8   :  { %v129_v13 = vadd.f32 %v128_v12, %v77_v11 }
  0xd9   :  { %v1099_v14 = vpop.f32.mrf.mxu0 }
  0xda   :  { %v143_v15 = vpack.c.bf16 %v129_v13, %v129_v13 }
  0xdb   :  { %v131_v16 = vpop.f32.mrf.mxu0 }
  0xdc   :  { %v132_v17 = vadd.f32 %v131_v16, %v77_v11  ;;  %v156_v18 = vsel %vm90_vm1, %v143_v15, 0 }
  0xdd   :  { %v1100_v19 = vpop.f32.mrf.mxu0  ;;  %1102 = vmatpush3.bf16.xpose.msra.mxu1 %v156_v18 }
  0xde   :  { %v1346_v20 = vpack.c.bf16 %v132_v17, %v132_v17  ;;  %v1201_v21 = vpack.i.bf16 %v132_v17, %v129_v13  ;;  %1113 = vmatprep.subr.bf16.mxu1 %v1291_v0 }
  0xe0   :  { %1202 = vrot.lane.b32.xlu0 %v1201_v21, %s1289_s15  ;;  %v208_v22 = vsel %vm90_vm1, %v1346_v20, 0 }
  0xe1   :  { %1108 = vmatpush3.bf16.xpose.msra.mxu0 %v208_v22 }
  0xe2   :  { %1119 = vmatprep.subr.bf16.mxu0 %v1291_v0 }
  0xe4   :  { %1104 = vmatmul.mubr.msk.bf16.vlgmr.msra.gmra.mxu1 %vm90_vm1, %v1220_v23 }
  0xe5   :  { %1115 = vmatprep.mubr.msk.bf16.mxu1 %vm1292_vm0, %v1291_v0 }
  0xe8   :  { %1110 = vmatmul.mubr.msk.bf16.vlgmr.msra.gmra.mxu0 %vm90_vm1, %v1221_v24 }
  0xe9   :  { %1121 = vmatprep.mubr.msk.bf16.mxu0 %vm1292_vm0, %v1291_v0 }
 0x152   :  { %v1203_v25 = vpop.permute.xlu0 %1202 }
 0x153   :  { %v1205_v26 = vunpack.i.h.bf16 %v1203_v25  ;;  %v1204_v27 = vunpack.i.l.bf16 %v1203_v25 }
 0x155   :  { %v1359_v28 = vpack.c.bf16 %v1205_v26, %v1205_v26  ;;  %v1361_v29 = vpack.c.bf16 %v1204_v27, %v1204_v27 }
 0x157   :  { %v260_v30 = vsel %vm90_vm1, %v1361_v29, 0  ;;  %v312_v31 = vsel %vm90_vm1, %v1359_v28, 0 }
 0x158   :  { %1114 = vmatpush3.bf16.xpose.msra.mxu1 %v260_v30  ;;  %1120 = vmatpush3.bf16.xpose.msra.mxu0 %v312_v31 }
 0x159   :  { %1125 = vmatprep.subr.bf16.mxu1 %v1291_v0  ;;  %1131 = vmatprep.subr.bf16.mxu0 %v1291_v0 }
 0x15f   :  { %1116 = vmatmul.mubr.msk.bf16.vlgmr.msra.gmra.mxu1 %vm90_vm1, %v1222_v32  ;;  %1122 = vmatmul.mubr.msk.bf16.vlgmr.msra.gmra.mxu0 %vm90_vm1, %v1223_v33 }
 0x160   :  { %1127 = vmatprep.mubr.msk.bf16.mxu1 %vm1292_vm0, %v1291_v0  ;;  %1133 = vmatprep.mubr.msk.bf16.mxu0 %vm1292_vm0, %v1291_v0 }
 0x1a4   :  { %v192_v34 = vpop.f32.mrf.mxu1 }
 0x1a5   :  { %v356_v35 = vsel %vm355_vm2, %v192_v34, -inf }
 0x1a6   :  { %v1105_v36 = vpop.f32.mrf.mxu1  ;;  %357 = vmax.xlane.f32.xlu0 %v356_v35 }
 0x1a8   :  { %v195_v37 = vpop.f32.mrf.mxu1  ;;  %v244_v38 = vpop.f32.mrf.mxu0 }
 0x1a9   :  { %v359_v39 = vsel %vm355_vm2, %v195_v37, -inf  ;;  %v362_v42 = vsel %vm355_vm2, %v244_v38, -inf }
 0x1aa   :  { %360 = vmax.xlane.f32.xlu1 %v359_v39  ;;  %v1111_v40 = vpop.f32.mrf.mxu0  ;;  %v1106_v41 = vpop.f32.mrf.mxu1 }
 0x1ac   :  { %v247_v43 = vpop.f32.mrf.mxu0 }
 0x1ad   :  { %v365_v45 = vsel %vm355_vm2, %v247_v43, -inf }
 0x1ae   :  { %363 = vmax.xlane.f32.xlu1 %v362_v42  ;;  %v1112_v44 = vpop.f32.mrf.mxu0 }
 0x1b2   :  { %366 = vmax.xlane.f32.xlu1 %v365_v45 }
 0x1bc   :  { %449 = vrot.lane.b32.xlu0 %v143_v15, %s1293_s0 }
 0x21f   :  { %v296_v46 = vpop.f32.mrf.mxu1  ;;  %v348_v47 = vpop.f32.mrf.mxu0 }
 0x220   :  { %v368_v48 = vsel %vm355_vm2, %v296_v46, -inf  ;;  %v374_v56 = vsel %vm355_vm2, %v348_v47, -inf }
 0x221   :  { %v1117_v49 = vpop.f32.mrf.mxu1  ;;  %369 = vmax.xlane.f32.xlu1 %v368_v48  ;;  %v1123_v50 = vpop.f32.mrf.mxu0 }
 0x223   :  { %v299_v51 = vpop.f32.mrf.mxu1  ;;  %v351_v52 = vpop.f32.mrf.mxu0 }
 0x224   :  { %v371_v53 = vsel %vm355_vm2, %v299_v51, -inf  ;;  %v377_v57 = vsel %vm355_vm2, %v351_v52, -inf }
 0x225   :  { %v1118_v54 = vpop.f32.mrf.mxu1  ;;  %372 = vmax.xlane.f32.xlu1 %v371_v53  ;;  %v1124_v55 = vpop.f32.mrf.mxu0 }
 0x229   :  { %375 = vmax.xlane.f32.xlu1 %v374_v56 }
 0x22d   :  { %378 = vmax.xlane.f32.xlu1 %v377_v57 }
 0x22f   :  { %v358_v58 = vpop.xlane.xlu0 %357 }
 0x230   :  { %v380_v3 = vsub.f32 %v192_v34, %v358_v58 }
 0x232   :  { %v388_v5 = vmul.f32 1.442695, %v380_v3 }
 0x233   :  { %v361_v59 = vpop.xlane.xlu1 %360  ;;  %v450_v60 = vpop.permute.xlu0 %449 }
 0x234   :  { %v456_v61 = vsel %vm454_vm3, %v450_v60, 0  ;;  %v381_v6 = vsub.f32 %v195_v37, %v361_v59 }
 0x235   :  { %1126 = vmatpush3.bf16.msra.mxu1 %v456_v61 }
 0x236   :  { %1137 = vmatprep.subr.bf16.mxu1 %v1291_v0  ;;  %v390_v9 = vmul.f32 1.442695, %v381_v6 }
 0x237   :  { %v364_v62 = vpop.xlane.xlu1 %363 }
 0x238   :  { %v382_v63 = vsub.f32 %v244_v38, %v364_v62 }
 0x23a   :  { %v392_v1 = vmul.f32 1.442695, %v382_v63 }
 0x23b   :  { %v367_v8 = vpop.xlane.xlu1 %366 }
 0x23c   :  { %1232 = vpow2.f32 %v392_v1  ;;  %v383_v11 = vsub.f32 %v247_v43, %v367_v8 }
 0x23d   :  { %1234 = vpow2.f32 %v388_v5 }
 0x23e   :  { %500 = vrot.lane.b32.xlu1 %v1346_v20, %s1293_s0  ;;  %1236 = vpow2.f32 %v390_v9  ;;  %v394_v12 = vmul.f32 1.442695, %v383_v11 }
 0x240   :  { %1238 = vpow2.f32 %v394_v12  ;;  %v1224_v12 = vld [vmem:[#allocation2 + $0x50] sm:$0xff]  }
 0x249   :  { %v1388_v2 = vpop.eup %1232 }
 0x24a   :  { %v410_v4 = vsel %vm355_vm2, %v1388_v2, 0.0  ;;  %v1235_v13 = vpop.eup %1234 }
 0x24b   :  { %411 = vadd.xlane.f32.xlu0 %v410_v4  ;;  %v404_v14 = vsel %vm355_vm2, %v1235_v13, 0.0  ;;  %v1237_v15 = vpop.eup %1236 }
 0x24c   :  { %v407_v16 = vsel %vm355_vm2, %v1237_v15, 0.0 }
 0x24d   :  { %v1239_v17 = vpop.eup %1238 }
 0x24e   :  { %v413_v18 = vsel %vm355_vm2, %v1239_v17, 0.0 }
 0x262   :  { %405 = vadd.xlane.f32.xlu1 %v404_v14 }
 0x266   :  { %408 = vadd.xlane.f32.xlu1 %v407_v16 }
 0x26a   :  { %414 = vadd.xlane.f32.xlu1 %v413_v18 }
 0x2aa   :  { %v370_v19 = vpop.xlane.xlu1 %369 }
 0x2ab   :  { %v384_v20 = vsub.f32 %v296_v46, %v370_v19 }
 0x2ad   :  { %v396_v21 = vmul.f32 1.442695, %v384_v20 }
 0x2ae   :  { %v373_v22 = vpop.xlane.xlu1 %372 }
 0x2af   :  { %1240 = vpow2.f32 %v396_v21  ;;  %v385_v23 = vsub.f32 %v299_v51, %v373_v22  ;;  %v1225_v21 = vld [vmem:[#allocation2 + $0x48] sm:$0xff]   ;;  %v1226_v22 = vld [vmem:[#allocation2 + $0x40] sm:$0xff]  }
 0x2b1   :  { %v398_v24 = vmul.f32 1.442695, %v385_v23 }
 0x2b2   :  { %v376_v25 = vpop.xlane.xlu1 %375 }
 0x2b3   :  { %1242 = vpow2.f32 %v398_v24  ;;  %v386_v26 = vsub.f32 %v348_v47, %v376_v25  ;;  %v1227_v24 = vld [vmem:[#allocation2 + $0x38] sm:$0xff]  }
 0x2b5   :  { %v400_v27 = vmul.f32 1.442695, %v386_v26 }
 0x2b6   :  { %v379_v30 = vpop.xlane.xlu1 %378 }
 0x2b7   :  { %1244 = vpow2.f32 %v400_v27  ;;  %v387_v31 = vsub.f32 %v351_v52, %v379_v30 }
 0x2b9   :  { %v402_v32 = vmul.f32 1.442695, %v387_v31  ;;  %v1228_v31 = vld [vmem:[#allocation2 + $0x78] sm:$0xff]  }
 0x2ba   :  { %v501_v33 = vpop.permute.xlu1 %500 }
 0x2bb   :  { %1246 = vpow2.f32 %v402_v32  ;;  %v506_v34 = vsel %vm454_vm3, %v501_v33, 0 }
 0x2bc   :  { %v1241_v35 = vpop.eup %1240  ;;  %1132 = vmatpush3.bf16.msra.mxu0 %v506_v34 }
 0x2bd   :  { %v416_v36 = vsel %vm355_vm2, %v1241_v35, 0.0  ;;  %1143 = vmatprep.subr.bf16.mxu0 %v1291_v0 }
 0x2be   :  { %417 = vadd.xlane.f32.xlu0 %v416_v36 }
 0x2c0   :  { %v1243_v37 = vpop.eup %1242 }
 0x2c1   :  { %v419_v38 = vsel %vm355_vm2, %v1243_v37, 0.0 }
 0x2c2   :  { %420 = vadd.xlane.f32.xlu1 %v419_v38 }
 0x2c4   :  { %v1245_v39 = vpop.eup %1244 }
 0x2c5   :  { %v422_v40 = vsel %vm355_vm2, %v1245_v39, 0.0 }
 0x2c6   :  { %423 = vadd.xlane.f32.xlu0 %v422_v40 }
 0x2c8   :  { %v1247_v41 = vpop.eup %1246 }
 0x2c9   :  { %v425_v42 = vsel %vm355_vm2, %v1247_v41, 0.0 }
 0x2ca   :  { %426 = vadd.xlane.f32.xlu1 %v425_v42 }
 0x2d4   :  { %v412_v44 = vpop.xlane.xlu0 %411 }
 0x2db   :  { %550 = vrot.lane.b32.xlu1 %v1361_v29, %s1293_s0 }
 0x2dc   :  { %600 = vrot.lane.b32.xlu0 %v1359_v28, %s1293_s0 }
 0x2eb   :  { %v406_v43 = vpop.xlane.xlu1 %405 }
 0x2ec   :  { %1248 = vrcp.f32 %v406_v43 }
 0x2ef   :  { %v409_v45 = vpop.xlane.xlu1 %408 }
 0x2f0   :  { %1250 = vrcp.f32 %v409_v45 }
 0x2f1   :  { %1252 = vrcp.f32 %v412_v44 }
 0x2f3   :  { %v415_v46 = vpop.xlane.xlu1 %414 }
 0x2f4   :  { %1254 = vrcp.f32 %v415_v46 }
 0x2f9   :  { %v1249_v47 = vpop.eup %1248 }
 0x2fa   :  { %v436_v49 = vmul.f32 %v1249_v47, %v1235_v13 }
 0x2fd   :  { %v1251_v48 = vpop.eup %1250 }
 0x2fe   :  { %v437_v50 = vmul.f32 %v1251_v48, %v1237_v15  ;;  %v1253_v51 = vpop.eup %1252 }
 0x2ff   :  { %v438_v29 = vmul.f32 %v1253_v51, %v1388_v2  ;;  %v1231_v51 = vld [vmem:[#allocation2 + $0x60] sm:$0xff]  }
 0x300   :  { %v444_v52 = vpack.c.bf16 %v437_v50, %v436_v49  ;;  %v1229_v49 = vld [vmem:[#allocation2 + $0x70] sm:$0xff]   ;;  %v1230_v50 = vld [vmem:[#allocation2 + $0x68] sm:$0xff]  }
 0x301   :  { %v1255_v53 = vpop.eup %1254 }
 0x302   :  { %1128 = vmatmul.mubr.msk.bf16.vlgmr.msra.gmra.mxu1 %vm355_vm2, %v444_v52  ;;  %v439_v28 = vmul.f32 %v1255_v53, %v1239_v17  ;;  %v50_v52 = vld [vmem:[#allocation2 + $0x58] sm:$0x1] }
 0x303   :  { %1139 = vmatprep.mubr.msk.bf16.mxu1 %vm1292_vm0, %v1291_v0  ;;  %v671_v53 = vunpack.c.l.bf16 %v50_v52 }
 0x304   :  { %v445_v54 = vpack.c.bf16 %v439_v28, %v438_v29 }
 0x306   :  { %1134 = vmatmul.mubr.msk.bf16.vlgmr.msra.gmra.mxu0 %vm355_vm2, %v445_v54  ;;  %v675_v54 = vrot.slane %v671_v53, %v1342_v10 }
 0x307   :  { %1145 = vmatprep.mubr.msk.bf16.mxu0 %vm1292_vm0, %v1291_v0 }
 0x347   :  { %v418_v55 = vpop.xlane.xlu0 %417 }
 0x348   :  { %1256 = vrcp.f32 %v418_v55 }
 0x34b   :  { %v421_v56 = vpop.xlane.xlu1 %420 }
 0x34c   :  { %1258 = vrcp.f32 %v421_v56 }
 0x34f   :  { %v424_v57 = vpop.xlane.xlu0 %423 }
 0x350   :  { %1260 = vrcp.f32 %v424_v57 }
 0x353   :  { %v601_v58 = vpop.permute.xlu0 %600  ;;  %v427_v59 = vpop.xlane.xlu1 %426 }
 0x354   :  { %v606_v60 = vsel %vm454_vm3, %v601_v58, 0  ;;  %1262 = vrcp.f32 %v427_v59 }
 0x355   :  { %1144 = vmatpush3.bf16.msra.mxu0 %v606_v60  ;;  %v1257_v61 = vpop.eup %1256 }
 0x356   :  { %v440_v2 = vmul.f32 %v1257_v61, %v1241_v35  ;;  %1161 = vmatprep.subr.bf16.mxu0 %v1228_v31 }
 0x357   :  { %v551_v62 = vpop.permute.xlu1 %550 }
 0x358   :  { %v556_v63 = vsel %vm454_vm3, %v551_v62, 0 }
 0x359   :  { %v1259_v1 = vpop.eup %1258  ;;  %1138 = vmatpush3.bf16.msra.mxu1 %v556_v63  ;;  %v61_v63 = vld [vmem:[#allocation2 + $0x88] sm:$0x2] }
 0x35a   :  { %v441_v3 = vmul.f32 %v1259_v1, %v1243_v37  ;;  %1149 = vmatprep.subr.bf16.mxu1 %v1224_v12  ;;  %v1053_v1 = vld [vmem:[#allocation2 + $0x98] sm:$0xff]  }
 0x35c   :  { %v446_v4 = vpack.c.bf16 %v441_v3, %v440_v2  ;;  %v1295_v2 = vmov 0   ;;  %v848_v3 = vunpack.c.l.bf16 %v61_v63 }
 0x35d   :  { %v1261_v5 = vpop.eup %1260  ;;  %1216 = vset.pattern.permute.xlu1 %v1295_v2  ;;  %1217 = vset.pattern.permute.xlu0 %v1295_v2 }
 0x35e   :  { %1140 = vmatmul.mubr.msk.bf16.vlgmr.msra.gmra.mxu1 %vm355_vm2, %v446_v4  ;;  %v442_v8 = vmul.f32 %v1261_v5, %v1245_v39  ;;  %v1051_v4 = vunpack.c.h.bf16 %v1053_v1  ;;  %v1050_v5 = vunpack.c.l.bf16 %v1053_v1 }
 0x35f   :  { %1150 = vmatpush3.bf16.msra.mxu1 %v1224_v12 }
 0x360   :  { %1151 = vmatprep.subr.bf16.mxu1 %v1225_v21 }
 0x361   :  { %v1263_v6 = vpop.eup %1262 }
 0x362   :  { %v443_v9 = vmul.f32 %v1263_v6, %v1247_v41  ;;  %v59_v6 = vld [vmem:[#allocation2 + $0x80] sm:$0x1] }
 0x363   :  { %1152 = vmatpush3.bf16.msra.mxu1 %v1225_v21 }
 0x364   :  { %v447_v11 = vpack.c.bf16 %v443_v9, %v442_v8  ;;  %1153 = vmatprep.subr.bf16.mxu1 %v1226_v22  ;;  %v758_v8 = vunpack.c.l.bf16 %v59_v6 }
 0x366   :  { %1146 = vmatmul.mubr.msk.bf16.vlgmr.msra.gmra.mxu0 %vm355_vm2, %v447_v11  ;;  %v762_v9 = vrot.slane %v758_v8, %v1342_v10 }
 0x367   :  { %1154 = vmatpush3.bf16.msra.mxu1 %v1226_v22  ;;  %1162 = vmatpush3.bf16.msra.mxu0 %v1228_v31 }
 0x368   :  { %1155 = vmatprep.subr.bf16.mxu1 %v1227_v24  ;;  %1163 = vmatprep.subr.bf16.mxu0 %v1229_v49 }
 0x36b   :  { %1156 = vmatpush3.bf16.msra.mxu1 %v1227_v24  ;;  %1164 = vmatpush3.bf16.msra.mxu0 %v1229_v49 }
 0x36c   :  { %1173 = vmatprep.subr.bf16.mxu1 %v1291_v0  ;;  %1165 = vmatprep.subr.bf16.mxu0 %v1230_v50 }
 0x36f   :  { %1166 = vmatpush3.bf16.msra.mxu0 %v1230_v50  ;;  %v977_v50 = vld [vmem:[%s1449_s1] sm:$0x1] }
 0x370   :  { %1167 = vmatprep.subr.bf16.mxu0 %v1231_v51 }
 0x373   :  { %1168 = vmatpush3.bf16.msra.mxu0 %v1231_v51 }
 0x374   :  { %1181 = vmatprep.subr.mxu0 %v1291_v0 }
 0x3c2   :  { %v492_v13 = vpop.f32.mrf.mxu1 }
 0x3c4   :  { %v1129_v14 = vpop.f32.mrf.mxu1 }
 0x3c6   :  { %v495_v15 = vpop.f32.mrf.mxu1  ;;  %v542_v16 = vpop.f32.mrf.mxu0 }
 0x3c8   :  { %v1130_v17 = vpop.f32.mrf.mxu1  ;;  %v1135_v18 = vpop.f32.mrf.mxu0 }
 0x3ca   :  { %v545_v19 = vpop.f32.mrf.mxu0 }
 0x3cc   :  { %v1136_v20 = vpop.f32.mrf.mxu0 }
 0x41e   :  { %v592_v23 = vpop.f32.mrf.mxu1 }
 0x420   :  { %v1141_v25 = vpop.f32.mrf.mxu1 }
 0x422   :  { %v595_v26 = vpop.f32.mrf.mxu1 }
 0x423   :  { %v1206_v27 = vpack.i.bf16 %v595_v26, %v592_v23 }
 0x424   :  { %v1142_v30 = vpop.f32.mrf.mxu1 }
 0x425   :  { %1207 = vrot.lane.b32.xlu1 %v1206_v27, %s1294_s22  ;;  %v60_v27 = vld [vmem:[#allocation2 + $0x88] sm:$0x1]  ;;  %v1052_v30 = vld [vmem:[#allocation2 + $0x90] sm:$0xff]  }
 0x426   :  { %v642_v32 = vpop.f32.mrf.mxu0  ;;  %v1047_v31 = vunpack.c.h.bf16 %v1052_v30 }
 0x428   :  { %v1147_v33 = vpop.f32.mrf.mxu0 }
 0x429   :  { %851 = vperm.xlu1 %1216, %v848_v3  }
 0x42a   :  { %v645_v34 = vpop.f32.mrf.mxu0 }
 0x42b   :  { %v1211_v35 = vpack.i.bf16 %v645_v34, %v642_v32  ;;  %v1046_v32 = vunpack.c.l.bf16 %v1052_v30 }
 0x42c   :  { %v1148_v36 = vpop.f32.mrf.mxu0 }
 0x42d   :  { %1212 = vrot.lane.b32.xlu0 %v1211_v35, %s1294_s22 }
 0x497   :  { %v1208_v37 = vpop.permute.xlu1 %1207 }
 0x498   :  { %v1210_v38 = vunpack.i.h.bf16 %v1208_v37  ;;  %v1209_v39 = vunpack.i.l.bf16 %v1208_v37 }
 0x49a   :  { %v666_v40 = vsel %vm90_vm1, %v495_v15, %v1210_v38  ;;  %v665_v41 = vsel %vm90_vm1, %v492_v13, %v1209_v39 }
 0x49b   :  { %v669_v42 = vpack.c.bf16 %v666_v40, %v665_v41 }
 0x49d   :  { %1157 = vmatprep.mubr.msk.bf16.mxu1 %vm700_vm4, %v669_v42 }
 0x49f   :  { %v1213_v43 = vpop.permute.xlu0 %1212 }
 0x4a0   :  { %v1215_v44 = vunpack.i.h.bf16 %v1213_v43  ;;  %v1214_v45 = vunpack.i.l.bf16 %v1213_v43 }
 0x4a2   :  { %v668_v46 = vsel %vm90_vm1, %v545_v19, %v1215_v44  ;;  %v667_v47 = vsel %vm90_vm1, %v542_v16, %v1214_v45  ;;  %v1296_v44 = vmov 1966171168  }
 0x4a3   :  { %v670_v48 = vpack.c.bf16 %v668_v46, %v667_v47  ;;  %v983_v45 = vunpack.c.l.s4 %v1296_v44 }
 0x4a4   :  { %v852_v33 = vpop.permute.xlu1 %851 }
 0x4a5   :  { %1158 = vmatmul.mubr.msk.bf16.vlgmr.msra.gmra.mxu1 %vm700_vm4, %v670_v48  ;;  %v853_v34 = vrot.slane %v852_v33, 2  ;;  %v984_v46 = vunpack.c.0.s8 %v983_v45 }
 0x4a6   :  { %1177 = vmatprep.mubr.msk.bf16.mxu1 %vm1292_vm0, %v1291_v0 }
 0x565   :  { %v1159_v29 = vpop.f32.mrf.mxu1 }
 0x566   :  { %v750_v60 = vadd.f32 %v1159_v29, %v675_v54 }
 0x567   :  { %v741_v28 = vpop.f32.mrf.mxu1 }
 0x568   :  { %v742_v58 = vadd.f32 %v741_v28, %v675_v54 }
 0x569   :  { %v1160_v55 = vpop.f32.mrf.mxu1 }
 0x56a   :  { %v753_v56 = vadd.f32 %v1160_v55, %v675_v54 }
 0x56b   :  { %v744_v57 = vpop.f32.mrf.mxu1 }
 0x56c   :  { %v745_v59 = vadd.f32 %v744_v57, %v675_v54  ;;  %v757_v62 = vpack.c.bf16 %v753_v56, %v750_v60 }
 0x56e   :  { %v756_v61 = vpack.c.bf16 %v745_v59, %v742_v58 }
 0x570   :  { %1169 = vmatprep.mubr.msk.bf16.mxu0 %vm700_vm4, %v756_v61 }
 0x571   :  { %1170 = vmatmul.mubr.msk.bf16.vlgmr.msra.gmra.mxu0 %vm700_vm4, %v757_v62 }
 0x572   :  { %1189 = vmatprep.mubr.msk.f32.mxu0 %vm1292_vm0, %v1291_v0  ;;  %1182 = vmatpush3.msra.mxu0 %v1051_v4 }
 0x573   :  { %1183 = vmatprep.subr.mxu0 %v1291_v0 }
 0x574   :  { %1184 = vmatpush3.msra.mxu0 %v1050_v5 }
 0x575   :  { %1185 = vmatprep.subr.mxu0 %v1291_v0 }
 0x576   :  { %1186 = vmatpush3.msra.mxu0 %v1047_v31 }
 0x577   :  { %1187 = vmatprep.subr.mxu0 %v1291_v0 }
 0x578   :  { %1188 = vmatpush3.msra.mxu0 %v1046_v32 }
 0x631   :  { %v1171_v11 = vpop.f32.mrf.mxu0 }
 0x632   :  { %v836_v13 = vadd.f32 %v1171_v11, %v762_v9 }
 0x633   :  { %v827_v12 = vpop.f32.mrf.mxu0 }
 0x634   :  { %v844_v17 = vmax.f32 %v836_v13, 0.0  ;;  %v828_v20 = vadd.f32 %v827_v12, %v762_v9 }
 0x635   :  { %v1172_v14 = vpop.f32.mrf.mxu0 }
 0x636   :  { %v839_v15 = vadd.f32 %v1172_v14, %v762_v9  ;;  %v842_v24 = vmax.f32 %v828_v20, 0.0 }
 0x637   :  { %v830_v16 = vpop.f32.mrf.mxu0 }
 0x638   :  { %v845_v18 = vmax.f32 %v839_v15, 0.0  ;;  %v831_v19 = vadd.f32 %v830_v16, %v762_v9 }
 0x63a   :  { %v847_v21 = vpack.c.bf16 %v845_v18, %v844_v17  ;;  %v843_v22 = vmax.f32 %v831_v19, 0.0 }
 0x63c   :  { %v862_v23 = vsel %vm90_vm1, %v847_v21, 0  ;;  %v846_v25 = vpack.c.bf16 %v843_v22, %v842_v24 }
 0x63d   :  { %1174 = vmatpush3.bf16.xpose.msra.mxu1 %v862_v23 }
 0x63e   :  { %1175 = vmatprep.subr.bf16.mxu1 %v1291_v0  ;;  %v859_v26 = vsel %vm90_vm1, %v846_v25, 0  ;;  %v987_v0 = vsub.s32 %v984_v46, %v1339_v7 }
 0x645   :  { %1176 = vmatpush3.bf16.xpose.msra.mxu1 %v859_v26 }
 0x64c   :  { %1178 = vmatmul.mubr.msk.bf16.vlgmr.msra.gmra.mxu1 %vm90_vm1, %v60_v27 }
 0x70c   :  { %v898_v35 = vpop.f32.mrf.mxu1 }
 0x70d   :  { %v899_v36 = vadd.f32 %v898_v35, %v853_v34 }
 0x70e   :  { %v1179_v37 = vpop.f32.mrf.mxu1 }
 0x70f   :  { %1190 = vmatmul.mubr.msk.f32.vlgmr.msra.gmra.mxu0 %vm90_vm1, %v899_v36 }
 0x710   :  { %v901_v38 = vpop.f32.mrf.mxu1 }
 0x712   :  { %v1180_v39 = vpop.f32.mrf.mxu1 }
 0x7cf   :  { %v973_v40 = vpop.f32.mrf.mxu0 }
 0x7d0   :  { %v978_v41 = vmul.f32 0.5, %v973_v40 }
 0x7d1   :  { %v1191_v42 = vpop.f32.mrf.mxu0 }
 0x7d2   :  { %v979_v43 = vmul.f32 1.442695, %v978_v41 }
 0x7d4   :  { %1264 = vpow2.f32 %v979_v43 }
 0x7e1   :  { %v1265_v47 = vpop.eup %1264 }
 0x7e2   :  { %v988_v48 = vrot.slane %v1265_v47, %v987_v0 }
 0x7e4   :  { %v989_v49 = vcombine.high %v988_v48, %v988_v48 }
 0x7e6   :  { %v996_v51 = vrot.slane %v989_v49, %v987_v0 }
 0x7e8   :  { %v998_v52 = vmul.f32 %v996_v51, %v977_v50 }
 0x7ea   :  { %v999_v53 = vadd.f32 %v998_v52, %v973_v40 }
 0x7ec   :  { %v1004_v29 = vrot.slane %v999_v53, %v1342_v10 }
 0x7ee   :  { %v1007_v28 = vsel %vm1006_vm5, %v973_v40, %v1004_v29 }
 0x7ef   :  { %1009 = vst.msk [vmem:[%s1451_s3] sm:$0x7] %vm1008_vm6, %v1007_v28 }
 0x7f0   :  { %1014 = vsyncpa [#allocation3], 1 }

</bundles_post_ra>
